<compile_context>
chip_gen: v6e
topology: v6e:2x2x1
jax: 0.10.0
libtpu: 0.0.40
codegen_flags: <defaults>
</compile_context>

<pallas_src>
import numpy as np
import jax
import jax.numpy as jnp
from jax.experimental import pallas as pl
from jax.experimental.pallas import tpu as pltpu

_LANE = 128


def _round_up(x, m):
    return ((x + m - 1) // m) * m


def _cdiv(a, b):
    return -(-a // b)


def _mlp_kernel(x_ref, w1_ref, b1_ref, w2_ref, b2_ref, w3_ref, b3_ref, o_ref):
    """One batch tile: relu(relu(x@w1+b1)@w2+b2)@w3+b3 (f32 accumulation)."""
    cdt = w1_ref.dtype
    # Layer 1: bf16 MXU matmul, f32 accumulate; bias+ReLU fused, recast to bf16.
    h = jnp.dot(x_ref[...], w1_ref[...], preferred_element_type=jnp.float32)
    h = jnp.maximum(h + b1_ref[...], 0.0).astype(cdt)
    # Layer 2
    h = jnp.dot(h, w2_ref[...], preferred_element_type=jnp.float32)
    h = jnp.maximum(h + b2_ref[...], 0.0).astype(cdt)
    # Output layer (no activation)
    out = jnp.dot(h, w3_ref[...], preferred_element_type=jnp.float32) + b3_ref[...]
    o_ref[...] = out.astype(o_ref.dtype)


def prepare_mlp_params(w1, b1, w2, b2, w3, b3, compute_dtype=jnp.bfloat16):
    """One-time weight prep (hoisted out of the per-call path).

    Accepts PyTorch nn.Linear layout: w_k (out_k, in_k), b_k (out_k,).
    Returns weights transposed to (in, out) in compute_dtype and biases as
    f32 (1, out) lane rows (bias is added after f32 accumulation).
    """
    def prep(w, b):
        w = jnp.asarray(w)
        b = jnp.asarray(b)
        return w.T.astype(compute_dtype), b.reshape(1, -1).astype(jnp.float32)

    w1c, b1c = prep(w1, b1)
    w2c, b2c = prep(w2, b2)
    w3c, b3c = prep(w3, b3)
    return {"w1": w1c, "b1": b1c, "w2": w2c, "b2": b2c, "w3": w3c, "b3": b3c}


def _tpu_vmem_capacity_bytes():
    try:
        return int(pltpu.get_tpu_info().vmem_capacity_bytes)
    except Exception:
        return 64 * 1024 * 1024  # conservative (v7x per-TensorCore)


def _choose_tile_b(B, sub, tile_cap):
    """Batch tile: minimal padding, >=2 grid steps when the batch is big enough."""
    if B <= sub:
        return sub
    steps = max(2, _cdiv(B, tile_cap))
    tile_b = _round_up(_cdiv(B, steps), sub)
    return max(sub, min(tile_b, tile_cap, _round_up(B, sub)))


def _vmem_estimate(tile_b, F, H1, H2, O, cbytes, obytes, sub):
    """Rough VMEM footprint (lane-padded), assuming default double buffering."""
    def tile(r, c, itemsize, s):
        return _round_up(max(r, 1), s) * _round_up(c, _LANE) * itemsize

    io = 2 * tile(tile_b, F, cbytes, sub) + 2 * tile(tile_b, O, obytes, 8)
    wgt = 2 * (tile(F, H1, cbytes, sub) + tile(H1, H2, cbytes, sub)
               + tile(H2, O, cbytes, sub))
    bias = 2 * (tile(1, H1, 4, 8) + tile(1, H2, 4, 8) + tile(1, O, 4, 8))
    tmp = (tile(tile_b, H1, 4, 8) + tile(tile_b, H2, 4, 8) + tile(tile_b, O, 4, 8)
           + tile(tile_b, H1, cbytes, sub) + tile(tile_b, H2, cbytes, sub))
    return io + wgt + bias + tmp


def mlp_forward(x, params):
    """relu(relu(x @ W1.T + b1) @ W2.T + b2) @ W3.T + b3, fused in one kernel.

    x: (B, n_feature); params: from prepare_mlp_params. Returns (B, n_output)
    in x.dtype. Pure / jit-compatible (no host syncs, no weight re-packing).
    """
    w1, b1 = params["w1"], params["b1"]
    w2, b2 = params["w2"], params["b2"]
    w3, b3 = params["w3"], params["b3"]
    B, F = x.shape
    H1, H2, O = w1.shape[1], w2.shape[1], w3.shape[1]
    assert w1.shape[0] == F and w2.shape[0] == H1 and w3.shape[0] == H2

    compute_dtype = w1.dtype
    cbytes = np.dtype(compute_dtype).itemsize
    out_dtype = x.dtype
    obytes = np.dtype(out_dtype).itemsize
    sub = 16 if cbytes == 2 else 8

    vmem_cap = _tpu_vmem_capacity_bytes()
    # Headroom below per-core capacity for Mosaic internal scratch (48 MiB on v7x).
    budget = max(32 << 20, min(vmem_cap, 128 << 20) - (16 << 20))
    # Bigger batch tiles on v5e/v6e (128 MiB VMEM); 512 cap otherwise (v7x).
    tile_cap = 1024 if vmem_cap >= (100 << 20) else 512

    tile_b = _choose_tile_b(B, sub, tile_cap)
    while tile_b > sub and _vmem_estimate(tile_b, F, H1, H2, O,
                                          cbytes, obytes, sub) > budget:
        tile_b = max(sub, _round_up(tile_b // 2, sub))
    est = _vmem_estimate(tile_b, F, H1, H2, O, cbytes, obytes, sub)
    # NOTE: if the three resident weights alone exceed `budget` (multi-thousand
    # hidden sizes on v7x), a K/N-tiled grid with an f32 accumulator (P3) would
    # be needed; not required for typical MLP head sizes.
    vmem_limit = int(min(budget, max(32 << 20, 1.3 * est + (2 << 20))))

    Bp = _round_up(B, tile_b)
    grid = (Bp // tile_b,)

    # Only the batch dim is padded (rows sliced off below); no lane padding.
    xp = jnp.pad(x, ((0, Bp - B), (0, 0))).astype(compute_dtype)

    cost = pl.CostEstimate(
        flops=2 * Bp * (F * H1 + H1 * H2 + H2 * O),
        transcendentals=0,
        bytes_accessed=(Bp * F * cbytes
                        + (F * H1 + H1 * H2 + H2 * O) * cbytes
                        + (H1 + H2 + O) * 4
                        + Bp * O * obytes),
    )

    outp = pl.pallas_call(
        _mlp_kernel,
        out_shape=jax.ShapeDtypeStruct((Bp, O), out_dtype),
        grid_spec=pltpu.PrefetchScalarGridSpec(
            num_scalar_prefetch=0,
            grid=grid,
            in_specs=[
                pl.BlockSpec((tile_b, F), lambda i: (i, 0)),   # x (batch-tiled)
                pl.BlockSpec((F, H1), lambda i: (0, 0)),       # w1 (resident)
                pl.BlockSpec((1, H1), lambda i: (0, 0)),       # b1
                pl.BlockSpec((H1, H2), lambda i: (0, 0)),      # w2
                pl.BlockSpec((1, H2), lambda i: (0, 0)),       # b2
                pl.BlockSpec((H2, O), lambda i: (0, 0)),       # w3
                pl.BlockSpec((1, O), lambda i: (0, 0)),        # b3
            ],
            out_specs=pl.BlockSpec((tile_b, O), lambda i: (i, 0)),
        ),
        compiler_params=pltpu.CompilerParams(
            # (pltpu.CORE_PARALLEL is a candidate here for v7x's 2 TCs; plain
            #  "parallel" is kept for portability across jax versions/chips.)
            dimension_semantics=("parallel",),
            vmem_limit_bytes=vmem_limit,
        ),
        cost_estimate=cost,
    )(xp, w1, b1, w2, b2, w3, b3)

    return outp[:B]


if __name__ == "__main__":
    # Net(n_feature=32, n_hidden1=64, n_hidden2=64, n_output=16), batch 8.
    B, n_feature, n_hidden1, n_hidden2, n_output = 8, 32, 64, 64, 16

    key = jax.random.PRNGKey(0)
    kx, k1, kb1, k2, kb2, k3, kb3 = jax.random.split(key, 7)

    x = jax.random.normal(kx, (B, n_feature), dtype=jnp.float32)

    # PyTorch nn.Linear init: W (out,in), b (out,), U(-1/sqrt(fan_in), +1/sqrt(fan_in)).
    def init_linear(kw, kb, fan_in, fan_out):
        bound = 1.0 / float(np.sqrt(fan_in))
        w = jax.random.uniform(kw, (fan_out, fan_in), jnp.float32, -bound, bound)
        b = jax.random.uniform(kb, (fan_out,), jnp.float32, -bound, bound)
        return w, b

    w1, b1 = init_linear(k1, kb1, n_feature, n_hidden1)
    w2, b2 = init_linear(k2, kb2, n_hidden1, n_hidden2)
    w3, b3 = init_linear(k3, kb3, n_hidden2, n_output)

    params = prepare_mlp_params(w1, b1, w2, b2, w3, b3)   # one-time weight prep
    fwd = jax.jit(mlp_forward)

    out = jax.block_until_ready(fwd(x, params))

    # Reference with the same bf16-matmul / f32-accumulation recipe.
    def ref_bf16(x):
        d = jnp.bfloat16
        h = jnp.maximum(jnp.dot(x.astype(d), w1.T.astype(d),
                                preferred_element_type=jnp.float32) + b1, 0.0)
        h = jnp.maximum(jnp.dot(h.astype(d), w2.T.astype(d),
                                preferred_element_type=jnp.float32) + b2, 0.0)
        return jnp.dot(h.astype(d), w3.T.astype(d),
                       preferred_element_type=jnp.float32) + b3

    ref = ref_bf16(x)
    ref_f32 = jnp.maximum(x @ w1.T + b1, 0.0)
    ref_f32 = jnp.maximum(ref_f32 @ w2.T + b2, 0.0) @ w3.T + b3

    assert out.shape == (B, n_output)
    assert jnp.allclose(out, ref, atol=2e-2, rtol=2e-2), \
        float(jnp.max(jnp.abs(out - ref)))
    # bf16-rounding-only difference vs pure-f32 math (intentional perf trade-off).
    assert jnp.allclose(out, ref_f32, atol=1.5e-1, rtol=1.5e-1)

    print("KERNEL_OK")
</pallas_src>

<mosaic_0001>
module attributes {stable_mosaic.version = 11 : i64} {
  func.func @_mlp_kernel(%arg0: i32, %arg1: memref<16x32xbf16, #tpu.memory_space<vmem>>, %arg2: memref<32x64xbf16, #tpu.memory_space<vmem>>, %arg3: memref<1x64xf32, #tpu.memory_space<vmem>>, %arg4: memref<64x64xbf16, #tpu.memory_space<vmem>>, %arg5: memref<1x64xf32, #tpu.memory_space<vmem>>, %arg6: memref<64x16xbf16, #tpu.memory_space<vmem>>, %arg7: memref<1x16xf32, #tpu.memory_space<vmem>>, %arg8: memref<16x16xf32, #tpu.memory_space<vmem>>) attributes {dimension_semantics = [#tpu.dimension_semantics<parallel>], iteration_bounds = array<i64: 1>, scalar_prefetch = 0 : i64, scratch_operands = 0 : i64, tpu.core_type = #tpu.core_type<tc>, window_params = [{transform_indices = @transform_0, window_bounds = array<i64: 16, 32>}, {pipeline_mode = #tpu.pipeline_mode<synchronous>, transform_indices = @transform_1, window_bounds = array<i64: 32, 64>}, {pipeline_mode = #tpu.pipeline_mode<synchronous>, transform_indices = @transform_2, window_bounds = array<i64: 1, 64>}, {pipeline_mode = #tpu.pipeline_mode<synchronous>, transform_indices = @transform_3, window_bounds = array<i64: 64, 64>}, {pipeline_mode = #tpu.pipeline_mode<synchronous>, transform_indices = @transform_4, window_bounds = array<i64: 1, 64>}, {pipeline_mode = #tpu.pipeline_mode<synchronous>, transform_indices = @transform_5, window_bounds = array<i64: 64, 16>}, {pipeline_mode = #tpu.pipeline_mode<synchronous>, transform_indices = @transform_6, window_bounds = array<i64: 1, 16>}, {transform_indices = @transform_7, window_bounds = array<i64: 16, 16>}]} {
    %c0 = arith.constant 0 : index
    %c0_0 = arith.constant 0 : index
    %0 = vector.load %arg1[%c0, %c0_0] : memref<16x32xbf16, #tpu.memory_space<vmem>>, vector<16x32xbf16>
    %c0_1 = arith.constant 0 : index
    %c0_2 = arith.constant 0 : index
    %1 = vector.load %arg2[%c0_1, %c0_2] : memref<32x64xbf16, #tpu.memory_space<vmem>>, vector<32x64xbf16>
    %cst = arith.constant dense<0.000000e+00> : vector<16x64xf32>
    %2 = tpu.matmul %0, %1, %cst {dimension_numbers = #tpu.dot_dimension_numbers<[1], [0], [0], [1], [0, 0, 1, 1], [], []>} : vector<16x32xbf16>, vector<32x64xbf16>, vector<16x64xf32> -> vector<16x64xf32>
    %c0_3 = arith.constant 0 : index
    %c0_4 = arith.constant 0 : index
    %3 = vector.load %arg3[%c0_3, %c0_4] : memref<1x64xf32, #tpu.memory_space<vmem>>, vector<1x64xf32>
    %4 = vector.broadcast %3 : vector<1x64xf32> to vector<16x64xf32>
    %5 = arith.addf %2, %4 : vector<16x64xf32>
    %cst_5 = arith.constant 0.000000e+00 : f32
    %6 = vector.broadcast %cst_5 : f32 to vector<16x64xf32>
    %7 = arith.maximumf %5, %6 : vector<16x64xf32>
    %8 = arith.truncf %7 : vector<16x64xf32> to vector<16x64xbf16>
    %c0_6 = arith.constant 0 : index
    %c0_7 = arith.constant 0 : index
    %9 = vector.load %arg4[%c0_6, %c0_7] : memref<64x64xbf16, #tpu.memory_space<vmem>>, vector<64x64xbf16>
    %cst_8 = arith.constant dense<0.000000e+00> : vector<16x64xf32>
    %10 = tpu.matmul %8, %9, %cst_8 {dimension_numbers = #tpu.dot_dimension_numbers<[1], [0], [0], [1], [0, 0, 1, 1], [], []>} : vector<16x64xbf16>, vector<64x64xbf16>, vector<16x64xf32> -> vector<16x64xf32>
    %c0_9 = arith.constant 0 : index
    %c0_10 = arith.constant 0 : index
    %11 = vector.load %arg5[%c0_9, %c0_10] : memref<1x64xf32, #tpu.memory_space<vmem>>, vector<1x64xf32>
    %12 = vector.broadcast %11 : vector<1x64xf32> to vector<16x64xf32>
    %13 = arith.addf %10, %12 : vector<16x64xf32>
    %cst_11 = arith.constant 0.000000e+00 : f32
    %14 = vector.broadcast %cst_11 : f32 to vector<16x64xf32>
    %15 = arith.maximumf %13, %14 : vector<16x64xf32>
    %16 = arith.truncf %15 : vector<16x64xf32> to vector<16x64xbf16>
    %c0_12 = arith.constant 0 : index
    %c0_13 = arith.constant 0 : index
    %17 = vector.load %arg6[%c0_12, %c0_13] : memref<64x16xbf16, #tpu.memory_space<vmem>>, vector<64x16xbf16>
    %cst_14 = arith.constant dense<0.000000e+00> : vector<16x16xf32>
    %18 = tpu.matmul %16, %17, %cst_14 {dimension_numbers = #tpu.dot_dimension_numbers<[1], [0], [0], [1], [0, 0, 1, 1], [], []>} : vector<16x64xbf16>, vector<64x16xbf16>, vector<16x16xf32> -> vector<16x16xf32>
    %c0_15 = arith.constant 0 : index
    %c0_16 = arith.constant 0 : index
    %19 = vector.load %arg7[%c0_15, %c0_16] : memref<1x16xf32, #tpu.memory_space<vmem>>, vector<1x16xf32>
    %20 = vector.broadcast %19 : vector<1x16xf32> to vector<16x16xf32>
    %21 = arith.addf %18, %20 : vector<16x16xf32>
    %c0_17 = arith.constant 0 : index
    %c0_18 = arith.constant 0 : index
    %22 = vector.load %arg8[%c0_17, %c0_18] : memref<16x16xf32, #tpu.memory_space<vmem>>, vector<16x16xf32>
    tpu.vector_store %arg8[%c0_17, %c0_18], %21 {strides = array<i32>} : memref<16x16xf32, #tpu.memory_space<vmem>>, vector<16x16xf32>,
    return
  }
  func.func @transform_0(%arg0: i32) -> (i32, i32) {
    %c0_i32 = arith.constant 0 : i32
    %c0_i32_0 = arith.constant 0 : i32
    return %arg0, %c0_i32 : i32, i32
  }
  func.func @transform_1(%arg0: i32) -> (i32, i32) {
    %c0_i32 = arith.constant 0 : i32
    %c0_i32_0 = arith.constant 0 : i32
    %c0_i32_1 = arith.constant 0 : i32
    return %c0_i32, %c0_i32_0 : i32, i32
  }
  func.func @transform_2(%arg0: i32) -> (i32, i32) {
    %c0_i32 = arith.constant 0 : i32
    %c0_i32_0 = arith.constant 0 : i32
    %c0_i32_1 = arith.constant 0 : i32
    return %c0_i32, %c0_i32_0 : i32, i32
  }
  func.func @transform_3(%arg0: i32) -> (i32, i32) {
    %c0_i32 = arith.constant 0 : i32
    %c0_i32_0 = arith.constant 0 : i32
    %c0_i32_1 = arith.constant 0 : i32
    return %c0_i32, %c0_i32_0 : i32, i32
  }
  func.func @transform_4(%arg0: i32) -> (i32, i32) {
    %c0_i32 = arith.constant 0 : i32
    %c0_i32_0 = arith.constant 0 : i32
    %c0_i32_1 = arith.constant 0 : i32
    return %c0_i32, %c0_i32_0 : i32, i32
  }
  func.func @transform_5(%arg0: i32) -> (i32, i32) {
    %c0_i32 = arith.constant 0 : i32
    %c0_i32_0 = arith.constant 0 : i32
    %c0_i32_1 = arith.constant 0 : i32
    return %c0_i32, %c0_i32_0 : i32, i32
  }
  func.func @transform_6(%arg0: i32) -> (i32, i32) {
    %c0_i32 = arith.constant 0 : i32
    %c0_i32_0 = arith.constant 0 : i32
    %c0_i32_1 = arith.constant 0 : i32
    return %c0_i32, %c0_i32_0 : i32, i32
  }
  func.func @transform_7(%arg0: i32) -> (i32, i32) {
    %c0_i32 = arith.constant 0 : i32
    %c0_i32_0 = arith.constant 0 : i32
    return %arg0, %c0_i32 : i32, i32
  }
}

</mosaic_0001>

<bundles_post_ra>
// kernel: mlp_forward.1
= control target key start
LH: loop header
LB: loop body
LE: loop exit
PB: predicated region body
PF: predicated region fallthrough
CT: control target
= control target key end

     0   :  { %v357_v0 = vmov 0.0   ;;  %vm358_vm0 = vmmov 0   ;;  %vm57_vm1 = vcmask 261120   ;;  %vm144_vm2 = vcmask 523264   ;;  %s452_s1 = inlined_call_operand.vmem [shape: bf16[32,64], index: 1, kind: input, shape index: {}]   ;;  %s453_s3 = inlined_call_operand.vmem [shape: bf16[64,64], index: 3, kind: input, shape index: {}]   ;;  %s454_s0 = inlined_call_operand.vmem [shape: bf16[16,32], index: 0, kind: input, shape index: {}]   ;;  %s455_s5 = inlined_call_operand.vmem [shape: bf16[64,16], index: 5, kind: input, shape index: {}]   ;;  %s456_s2 = inlined_call_operand.vmem [shape: f32[1,64], index: 2, kind: input, shape index: {}]   ;;  %s457_s4 = inlined_call_operand.vmem [shape: f32[1,64], index: 4, kind: input, shape index: {}]   ;;  %s458_s6 = inlined_call_operand.vmem [shape: f32[1,16], index: 6, kind: input, shape index: {}]   ;;  %s459_s7 = inlined_call_operand.vmem [shape: f32[16,16], index: 7, kind: output, shape index: {}]  }
   0x1   :  { %312 = vmatprep.subr.bf16.mxu0 %v357_v0  ;;  %v346_v1 = vld [vmem:[%s452_s1 + $0x8] sm:$0xff]   ;;  %316 = vmatprep.mubr.msk.bf16.mxu0 %vm358_vm0, %v357_v0  ;;  %v347_v2 = vld [vmem:[%s452_s1] sm:$0xff]   ;;  %v349_v3 = vld [vmem:[%s453_s3 + $0x18] sm:$0xff]   ;;  %vm275_vm3 = vcmask 130048  }
   0x2   :  { %320 = vmatprep.subr.bf16.mxu1 %v357_v0  ;;  %328 = vmatprep.mubr.msk.bf16.mxu1 %vm358_vm0, %v357_v0  ;;  %v348_v4 = vld [vmem:[%s454_s0] sm:$0xff]   ;;  %v350_v5 = vld [vmem:[%s453_s3 + $0x10] sm:$0xff]   ;;  %v351_v6 = vld [vmem:[%s453_s3 + $0x8] sm:$0xff]  }
   0x3   :  { %313 = vmatpush3.bf16.msra.mxu0 %v346_v1  ;;  %321 = vmatpush3.bf16.msra.mxu1 %v349_v3  ;;  %v352_v7 = vld [vmem:[%s453_s3] sm:$0xff]   ;;  %v353_v8 = vld [vmem:[%s455_s5 + $0x18] sm:$0xff]   ;;  %v354_v19 = vld [vmem:[%s455_s5 + $0x10] sm:$0xff]  }
   0x4   :  { %314 = vmatprep.subr.bf16.mxu0 %v357_v0  ;;  %322 = vmatprep.subr.bf16.mxu1 %v357_v0  ;;  %v282_v9 = vld [vmem:[%s456_s2] ss:$0 sm:$0xff]  ;;  %v355_v20 = vld [vmem:[%s455_s5 + $0x8] sm:$0xff]  }
   0x5   :  { %v356_v21 = vld [vmem:[%s455_s5] sm:$0xff]  }
   0x6   :  { %v287_v22 = vld [vmem:[%s457_s4] ss:$0 sm:$0xff] }
   0x7   :  { %315 = vmatpush3.bf16.msra.mxu0 %v347_v2  ;;  %323 = vmatpush3.bf16.msra.mxu1 %v350_v5  ;;  %v293_v32 = vld [vmem:[%s458_s6] ss:$0 sm:$0xff] }
   0x8   :  { %332 = vmatprep.subr.bf16.mxu0 %v357_v0  ;;  %324 = vmatprep.subr.bf16.mxu1 %v357_v0 }
   0xa   :  { %317 = vmatmul.mubr.msk.bf16.vlgmr.msra.gmra.mxu0 %vm57_vm1, %v348_v4 }
   0xb   :  { %340 = vmatprep.mubr.msk.bf16.mxu0 %vm358_vm0, %v357_v0  ;;  %325 = vmatpush3.bf16.msra.mxu1 %v351_v6 }
   0xc   :  { %326 = vmatprep.subr.bf16.mxu1 %v357_v0  ;;  %333 = vmatpush3.bf16.msra.mxu0 %v353_v8 }
   0xd   :  { %334 = vmatprep.subr.bf16.mxu0 %v357_v0 }
   0xf   :  { %327 = vmatpush3.bf16.msra.mxu1 %v352_v7 }
  0x10   :  { %335 = vmatpush3.bf16.msra.mxu0 %v354_v19 }
  0x11   :  { %336 = vmatprep.subr.bf16.mxu0 %v357_v0 }
  0x14   :  { %337 = vmatpush3.bf16.msra.mxu0 %v355_v20 }
  0x15   :  { %338 = vmatprep.subr.bf16.mxu0 %v357_v0 }
  0x18   :  { %339 = vmatpush3.bf16.msra.mxu0 %v356_v21 }
  0xca   :  { %v95_v10 = vpop.f32.mrf.mxu0 }
  0xcb   :  { %v96_v12 = vadd.f32 %v282_v9, %v95_v10 }
  0xcc   :  { %v318_v11 = vpop.f32.mrf.mxu0 }
  0xcd   :  { %v102_v16 = vmax.f32 %v96_v12, 0.0 }
  0xce   :  { %v98_v13 = vpop.f32.mrf.mxu0 }
  0xcf   :  { %v99_v14 = vadd.f32 %v282_v9, %v98_v13 }
  0xd0   :  { %v319_v15 = vpop.f32.mrf.mxu0 }
  0xd1   :  { %v103_v17 = vmax.f32 %v99_v14, 0.0 }
  0xd3   :  { %v104_v18 = vpack.c.bf16 %v103_v17, %v102_v16 }
  0xd5   :  { %329 = vmatmul.mubr.msk.bf16.vlgmr.msra.gmra.mxu1 %vm144_vm2, %v104_v18 }
 0x195   :  { %v182_v23 = vpop.f32.mrf.mxu1 }
 0x196   :  { %v183_v25 = vadd.f32 %v287_v22, %v182_v23 }
 0x197   :  { %v330_v24 = vpop.f32.mrf.mxu1 }
 0x198   :  { %v189_v29 = vmax.f32 %v183_v25, 0.0 }
 0x199   :  { %v185_v26 = vpop.f32.mrf.mxu1 }
 0x19a   :  { %v186_v27 = vadd.f32 %v287_v22, %v185_v26 }
 0x19b   :  { %v331_v28 = vpop.f32.mrf.mxu1 }
 0x19c   :  { %v190_v30 = vmax.f32 %v186_v27, 0.0 }
 0x19e   :  { %v191_v31 = vpack.c.bf16 %v190_v30, %v189_v29 }
 0x1a0   :  { %341 = vmatmul.mubr.msk.bf16.vlgmr.msra.gmra.mxu0 %vm144_vm2, %v191_v31 }
 0x260   :  { %v268_v33 = vpop.f32.mrf.mxu0 }
 0x261   :  { %v269_v34 = vadd.f32 %v293_v32, %v268_v33 }
 0x262   :  { %v342_v35 = vpop.f32.mrf.mxu0 }
 0x263   :  { %276 = vst.msk [vmem:[%s459_s7] sm:$0xff] %vm275_vm3, %v269_v34 }
 0x264   :  { %v271_v36 = vpop.f32.mrf.mxu0 }
 0x265   :  { %v272_v37 = vadd.f32 %v293_v32, %v271_v36 }
 0x266   :  { %v343_v38 = vpop.f32.mrf.mxu0 }
 0x267   :  { %277 = vst.msk [vmem:[%s459_s7 + $0x8] sm:$0xff] %vm275_vm3, %v272_v37 }

</bundles_post_ra>
